<compile_context>
chip_gen: v7x
topology: tpu7x:2x2x1
jax: 0.10.0
libtpu: 0.0.40
codegen_flags: <defaults>
</compile_context>

<pallas_src>
import functools
import math

import jax
import jax.numpy as jnp
from jax.experimental import pallas as pl
from jax.experimental.pallas import tpu as pltpu

EPS = 1e-5
C1, C2, C3 = 64, 128, 1024      # conv channel widths (fixed by the module)
F1, F2 = 512, 256               # fc hidden widths


def _round_up(x, m):
    return (x + m - 1) // m * m


def _fold_bn_from_pstats(pstats, gamma, beta, n_rows):
    """Training-mode BatchNorm folded into one scale/shift FMA.

    pstats: (B, 2, C) per-batch partial [sum, sum_of_squares] over rows.
    Returns (1, C) scale/shift with bn(y) == y * scale + shift.
    Runs either in the wrapper (between pallas_calls, tiny reductions) or inside
    the gridless head kernel (bn3).
    """
    s = jnp.sum(pstats[:, 0, :], axis=0, keepdims=True)         # (1, C)
    ss = jnp.sum(pstats[:, 1, :], axis=0, keepdims=True)        # (1, C)
    mu = s / n_rows
    var = jnp.maximum(ss / n_rows - mu * mu, 0.0)                # one-pass E[y^2]-mu^2
    scale = gamma * jax.lax.rsqrt(var + EPS)                     # rsqrt -> EUP slot
    shift = beta - mu * scale
    return scale, shift


def _row_mask(t, tn, n_valid):
    """(TN, 1) mask of rows in tile t that are real points (not padding)."""
    row = t * tn + jax.lax.broadcasted_iota(jnp.int32, (tn, 1), 0)
    return row < n_valid


def _partial_stats(y, valid):
    """(2, C) [sum, sum_of_squares] over the valid rows of a (TN, C) tile."""
    ym = jnp.where(valid, y, 0.0)
    return jnp.concatenate(
        [jnp.sum(ym, axis=0, keepdims=True),
         jnp.sum(ym * ym, axis=0, keepdims=True)], axis=0)


# --------------------------------------------------------------------------- kernels

def _conv1_kernel(x_ref, w_ref, y_ref, ps_ref, *, tn, n_pts, mxu_dtype):
    """conv1: y = x @ w1; accumulate per-batch BN1 partial stats across row tiles."""
    t = pl.program_id(1)
    y = jnp.dot(x_ref[...], w_ref[...], preferred_element_type=jnp.float32)
    st = _partial_stats(y, _row_mask(t, tn, n_pts))

    @pl.when(t == 0)
    def _init():
        ps_ref[...] = st

    @pl.when(t > 0)
    def _acc():
        ps_ref[...] += st

    y_ref[...] = y.astype(y_ref.dtype)


def _conv_mid_kernel(scale_ref, shift_ref, y_in_ref, w_ref,
                     y_out_ref, ps_out_ref, *, tn, n_pts, mxu_dtype):
    """bn(prev)+relu as one FMA, conv2 matmul, accumulate this layer's partial stats."""
    t = pl.program_id(1)
    h = jnp.maximum(y_in_ref[...].astype(jnp.float32) * scale_ref[...]
                    + shift_ref[...], 0.0)
    y = jnp.dot(h.astype(mxu_dtype), w_ref[...],
                preferred_element_type=jnp.float32)
    st = _partial_stats(y, _row_mask(t, tn, n_pts))

    @pl.when(t == 0)
    def _init():
        ps_out_ref[...] = st

    @pl.when(t > 0)
    def _acc():
        ps_out_ref[...] += st

    y_out_ref[...] = y.astype(y_out_ref.dtype)


def _conv3_kernel(scale_ref, shift_ref, y_in_ref, w_ref,
                  ps_out_ref, ymax_ref, ymin_ref, *, tn, n_pts, mxu_dtype):
    """bn2+relu, conv3 matmul; emit BN3 partial stats and running per-batch max/min
    of the raw conv3 output (the (B*N, 1024) tensor never leaves the kernel)."""
    t = pl.program_id(1)
    h = jnp.maximum(y_in_ref[...].astype(jnp.float32) * scale_ref[...]
                    + shift_ref[...], 0.0)
    y = jnp.dot(h.astype(mxu_dtype), w_ref[...],
                preferred_element_type=jnp.float32)
    valid = _row_mask(t, tn, n_pts)
    st = _partial_stats(y, valid)
    t_max = jnp.max(jnp.where(valid, y, -jnp.inf), axis=0, keepdims=True)
    t_min = jnp.min(jnp.where(valid, y, jnp.inf), axis=0, keepdims=True)

    @pl.when(t == 0)
    def _init():
        ps_out_ref[...] = st
        ymax_ref[...] = t_max
        ymin_ref[...] = t_min

    @pl.when(t > 0)
    def _acc():
        ps_out_ref[...] += st
        ymax_ref[...] = jnp.maximum(ymax_ref[...], t_max)
        ymin_ref[...] = jnp.minimum(ymin_ref[...], t_min)


def _head_kernel(ps3_ref, g3_ref, b3_ref, ymax_ref, ymin_ref,
                 fw1_ref, g4_ref, b4_ref, fw2_ref, g5_ref, b5_ref,
                 fw3_ref, fb3_ref, out_ref, *, n_rows, k, mxu_dtype):
    """bn3+relu on pooled features, fc1+bn4+relu, fc2+bn5+relu, fc3 + identity."""
    nb = out_ref.shape[0]
    scale3, shift3 = _fold_bn_from_pstats(ps3_ref[...], g3_ref[...], b3_ref[...],
                                          n_rows)
    # max_n relu(a*y+b) == relu(a*max_n y + b) for a>=0 and relu(a*min_n y + b) for
    # a<0, so the per-point max-pool was taken on the raw conv3 output.
    pooled = jnp.where(scale3 >= 0.0, ymax_ref[...], ymin_ref[...])     # (B, 1024)
    h = jnp.maximum(pooled * scale3 + shift3, 0.0)

    def fc_bn_relu(h, w_ref, g_ref, b_ref):
        y = jnp.dot(h.astype(mxu_dtype), w_ref[...],
                    preferred_element_type=jnp.float32)
        mu = jnp.sum(y, axis=0, keepdims=True) / nb
        var = jnp.maximum(jnp.sum(y * y, axis=0, keepdims=True) / nb - mu * mu, 0.0)
        sc = g_ref[...] * jax.lax.rsqrt(var + EPS)
        sh = b_ref[...] - mu * sc
        return jnp.maximum(y * sc + sh, 0.0)

    h = fc_bn_relu(h, fw1_ref, g4_ref, b4_ref)
    h = fc_bn_relu(h, fw2_ref, g5_ref, b5_ref)
    y = jnp.dot(h.astype(mxu_dtype), fw3_ref[...],
                preferred_element_type=jnp.float32) + fb3_ref[...]
    # identity bias generated in-kernel: flattened eye(k) has ones where idx%(k+1)==0
    idx = jax.lax.broadcasted_iota(jnp.int32, (1, k * k), 1)
    out_ref[...] = (y + jnp.where(idx % (k + 1) == 0, 1.0, 0.0)).astype(out_ref.dtype)


# --------------------------------------------------------------------------- wrapper

def stnkd_forward(x_bnk, params, k, *, row_tile=512, mxu_dtype=jnp.bfloat16):
    """STNkd forward.  x_bnk: (B, N, k) float32, channels-last.  Returns (B, k, k)."""
    B, N, K = x_bnk.shape
    assert K == k
    p = params
    f32 = jnp.float32

    tn = min(_round_up(N, 8), _round_up(row_tile, 8))      # row tile, multiple of 8
    n_pad = _round_up(N, tn)
    nt = n_pad // tn
    if n_pad != N:
        x_bnk = jnp.pad(x_bnk, ((0, 0), (0, n_pad - N), (0, 0)))
    n_rows = B * N                                         # true count for conv-stage BN

    # Pre-cast input + weights once for the MXU (halves the HBM DMA on bf16 path).
    x_mx = x_bnk.astype(mxu_dtype)
    w1 = p['conv1_w'].astype(mxu_dtype)
    w2 = p['conv2_w'].astype(mxu_dtype)
    w3 = p['conv3_w'].astype(mxu_dtype)
    fw1 = p['fc1_w'].astype(mxu_dtype)
    fw2 = p['fc2_w'].astype(mxu_dtype)
    fw3 = p['fc3_w'].astype(mxu_dtype)

    # Batch axis is independent work ("parallel" -> megacore sharding); the
    # row-tile axis carries the stat/max accumulation so it must stay "arbitrary".
    cparams = pltpu.CompilerParams(dimension_semantics=("parallel", "arbitrary"))
    # Per-step VMEM use is only a few MiB, so the default scoped VMEM limit is fine
    # on every generation (incl. v7x's 64 MiB); no vmem_limit_bytes override.

    def rows_spec(c):           # (B, n_pad, c) tiled into per-batch (tn, c) row tiles
        return pl.BlockSpec((None, tn, c), lambda b, t: (b, t, 0))

    def perb_spec(r, c):        # per-batch accumulator block, revisited across t
        return pl.BlockSpec((None, r, c), lambda b, t: (b, 0, 0))

    def full_spec(shape):       # whole (small) array resident in VMEM
        return pl.BlockSpec(shape, lambda b, t: (0,) * len(shape))

    # --- conv1 + BN1 partial stats ------------------------------------------
    y1, ps1 = pl.pallas_call(
        functools.partial(_conv1_kernel, tn=tn, n_pts=N, mxu_dtype=mxu_dtype),
        grid=(B, nt),
        in_specs=[rows_spec(K), full_spec(w1.shape)],
        out_specs=[rows_spec(C1), perb_spec(2, C1)],
        out_shape=[jax.ShapeDtypeStruct((B, n_pad, C1), mxu_dtype),
                   jax.ShapeDtypeStruct((B, 2, C1), f32)],
        compiler_params=cparams,
        cost_estimate=pl.CostEstimate(
            flops=2 * B * n_pad * K * C1, transcendentals=0,
            bytes_accessed=2 * (B * n_pad * K + K * C1 + B * n_pad * C1)),
    )(x_mx, w1)

    # Fold BN1 into a (1, C1) scale/shift once (tiny XLA reduction), instead of
    # recomputing it at every grid step of the next kernel.
    sc1, sh1 = _fold_bn_from_pstats(ps1, p['bn1_g'], p['bn1_b'], n_rows)

    # --- bn1 + relu + conv2 + BN2 partial stats ------------------------------
    y2, ps2 = pl.pallas_call(
        functools.partial(_conv_mid_kernel, tn=tn, n_pts=N, mxu_dtype=mxu_dtype),
        grid=(B, nt),
        in_specs=[full_spec((1, C1)), full_spec((1, C1)),
                  rows_spec(C1), full_spec(w2.shape)],
        out_specs=[rows_spec(C2), perb_spec(2, C2)],
        out_shape=[jax.ShapeDtypeStruct((B, n_pad, C2), mxu_dtype),
                   jax.ShapeDtypeStruct((B, 2, C2), f32)],
        compiler_params=cparams,
        cost_estimate=pl.CostEstimate(
            flops=2 * B * n_pad * C1 * C2, transcendentals=0,
            bytes_accessed=2 * (B * n_pad * (C1 + C2) + C1 * C2)),
    )(sc1, sh1, y1, w2)

    sc2, sh2 = _fold_bn_from_pstats(ps2, p['bn2_g'], p['bn2_b'], n_rows)

    # --- bn2 + relu + conv3 + BN3 partial stats + per-batch max/min pool -----
    ps3, ymax, ymin = pl.pallas_call(
        functools.partial(_conv3_kernel, tn=tn, n_pts=N, mxu_dtype=mxu_dtype),
        grid=(B, nt),
        in_specs=[full_spec((1, C2)), full_spec((1, C2)),
                  rows_spec(C2), full_spec(w3.shape)],
        out_specs=[perb_spec(2, C3),
                   pl.BlockSpec((1, C3), lambda b, t: (b, 0)),
                   pl.BlockSpec((1, C3), lambda b, t: (b, 0))],
        out_shape=[jax.ShapeDtypeStruct((B, 2, C3), f32),
                   jax.ShapeDtypeStruct((B, C3), f32),
                   jax.ShapeDtypeStruct((B, C3), f32)],
        compiler_params=cparams,
        cost_estimate=pl.CostEstimate(
            flops=2 * B * n_pad * C2 * C3, transcendentals=0,
            bytes_accessed=2 * (B * n_pad * C2 + C2 * C3) + 16 * B * C3),
    )(sc2, sh2, y2, w3)

    # --- bn3+relu on pooled features, fc stack, identity (gridless, tiny) -----
    out = pl.pallas_call(
        functools.partial(_head_kernel, n_rows=n_rows, k=k, mxu_dtype=mxu_dtype),
        out_shape=jax.ShapeDtypeStruct((B, k * k), f32),
    )(ps3, p['bn3_g'], p['bn3_b'], ymax, ymin,
      fw1, p['bn4_g'], p['bn4_b'], fw2, p['bn5_g'], p['bn5_b'],
      fw3, p['fc3_b'])
    return out.reshape(B, k, k)


# --------------------------------------------------------------------------- params / reference

def init_params(key, k):
    """PyTorch-equivalent parameter set.  Weights stored (in, out); biases/BN (1, C).
    BN gamma/beta are randomized (PyTorch default is gamma=1, beta=0) so the folded
    scale/shift and the negative-gamma max/min-pool path are actually exercised."""
    dims = {'conv1': (k, C1), 'conv2': (C1, C2), 'conv3': (C2, C3),
            'fc1': (C3, F1), 'fc2': (F1, F2), 'fc3': (F2, k * k)}
    bn_ch = {'bn1': C1, 'bn2': C2, 'bn3': C3, 'bn4': F1, 'bn5': F2}
    keys = iter(jax.random.split(key, 2 * len(dims) + 2 * len(bn_ch)))
    p = {}
    for name, (fi, fo) in dims.items():
        bound = 1.0 / math.sqrt(fi)
        p[name + '_w'] = jax.random.uniform(next(keys), (fi, fo), jnp.float32,
                                            -bound, bound)
        p[name + '_b'] = jax.random.uniform(next(keys), (1, fo), jnp.float32,
                                            -bound, bound)
    for name, c in bn_ch.items():
        p[name + '_g'] = jax.random.uniform(next(keys), (1, c), jnp.float32, -1.2, 1.2)
        p[name + '_b'] = jax.random.uniform(next(keys), (1, c), jnp.float32, -0.5, 0.5)
    return p


def stnkd_ref(x_bnk, params, k):
    """Pure-JAX f32 reference with the PyTorch module's exact semantics
    (conv/fc biases included, training-mode BatchNorm, max over points)."""
    p = params
    B, N, _ = x_bnk.shape
    dot = functools.partial(jnp.dot, precision=jax.lax.Precision.HIGHEST)

    def bn(y, g, b):
        mu = y.mean(0, keepdims=True)
        var = jnp.square(y - mu).mean(0, keepdims=True)
        return (y - mu) / jnp.sqrt(var + EPS) * g + b

    h = x_bnk.reshape(B * N, -1)
    h = jax.nn.relu(bn(dot(h, p['conv1_w']) + p['conv1_b'], p['bn1_g'], p['bn1_b']))
    h = jax.nn.relu(bn(dot(h, p['conv2_w']) + p['conv2_b'], p['bn2_g'], p['bn2_b']))
    h = jax.nn.relu(bn(dot(h, p['conv3_w']) + p['conv3_b'], p['bn3_g'], p['bn3_b']))
    h = h.reshape(B, N, C3).max(axis=1)
    h = jax.nn.relu(bn(dot(h, p['fc1_w']) + p['fc1_b'], p['bn4_g'], p['bn4_b']))
    h = jax.nn.relu(bn(dot(h, p['fc2_w']) + p['fc2_b'], p['bn5_g'], p['bn5_b']))
    h = dot(h, p['fc3_w']) + p['fc3_b']
    h = h + jnp.eye(k, dtype=jnp.float32).reshape(1, k * k)
    return h.reshape(B, k, k)


# --------------------------------------------------------------------------- demo

if __name__ == "__main__":
    # Small shapes: batch=4, feature dim k=16, N=40 points.  row_tile=16 forces a
    # multi-tile grid with a half-padded last tile, exercising masking + accumulation.
    B, K, N = 4, 16, 40
    key = jax.random.PRNGKey(0)
    kx, kp = jax.random.split(key)

    x_bkn = jax.random.normal(kx, (B, K, N), dtype=jnp.float32)   # PyTorch layout (B, K, N)
    x_bnk = jnp.transpose(x_bkn, (0, 2, 1))                       # channels-last for the kernel
    params = init_params(kp, K)

    ref = jax.block_until_ready(stnkd_ref(x_bnk, params, K))

    # Exact-semantics check: f32 MXU operands should match the f32 reference tightly.
    out_f32 = jax.block_until_ready(
        stnkd_forward(x_bnk, params, K, row_tile=16, mxu_dtype=jnp.float32))
    assert out_f32.shape == (B, K, K)
    if not jnp.allclose(out_f32, ref, atol=1e-2, rtol=1e-2):
        err = float(jnp.max(jnp.abs(out_f32 - ref)))
        raise AssertionError(f"f32 Pallas path mismatch vs reference (max abs err {err})")

    # Performance path: bf16 MXU operands (f32 accumulation).  Batch-statistics BN
    # over a tiny batch amplifies bf16 rounding vs the f32 reference, hence the
    # looser tolerance.
    out_bf16 = jax.block_until_ready(
        stnkd_forward(x_bnk, params, K, row_tile=16, mxu_dtype=jnp.bfloat16))
    assert out_bf16.shape == (B, K, K)
    if not jnp.allclose(out_bf16, ref, atol=1e-1, rtol=1e-1):
        err = float(jnp.max(jnp.abs(out_bf16 - ref)))
        raise AssertionError(f"bf16 Pallas path mismatch vs reference (max abs err {err})")

    # TODO(synk): BatchNorm running_mean/running_var buffer updates (a training-mode
    # side effect of the PyTorch module) are not modeled; only the forward output is.
    print("KERNEL_OK")
</pallas_src>

<mosaic_0001>
module attributes {stable_mosaic.version = 11 : i64} {
  func.func @_conv1_kernel(%arg0: i32, %arg1: i32, %arg2: memref<1x16x16xf32, #tpu.memory_space<vmem>>, %arg3: memref<16x64xf32, #tpu.memory_space<vmem>>, %arg4: memref<1x16x64xf32, #tpu.memory_space<vmem>>, %arg5: memref<1x2x64xf32, #tpu.memory_space<vmem>>) attributes {dimension_semantics = [#tpu.dimension_semantics<parallel>, #tpu.dimension_semantics<arbitrary>], iteration_bounds = array<i64: 4, 3>, scalar_prefetch = 0 : i64, scratch_operands = 0 : i64, tpu.core_type = #tpu.core_type<tc>, window_params = [{transform_indices = @transform_0, window_bounds = array<i64: 1, 16, 16>}, {pipeline_mode = #tpu.pipeline_mode<synchronous>, transform_indices = @transform_1, window_bounds = array<i64: 16, 64>}, {transform_indices = @transform_2, window_bounds = array<i64: 1, 16, 64>}, {transform_indices = @transform_3, window_bounds = array<i64: 1, 2, 64>}]} {
    %c0 = arith.constant 0 : index
    %c0_0 = arith.constant 0 : index
    %c0_1 = arith.constant 0 : index
    %0 = vector.load %arg2[%c0, %c0_0, %c0_1] : memref<1x16x16xf32, #tpu.memory_space<vmem>>, vector<1x16x16xf32>
    %1 = vector.shape_cast %0 : vector<1x16x16xf32> to vector<16x16xf32>
    %c0_2 = arith.constant 0 : index
    %c0_3 = arith.constant 0 : index
    %2 = vector.load %arg3[%c0_2, %c0_3] : memref<16x64xf32, #tpu.memory_space<vmem>>, vector<16x64xf32>
    %cst = arith.constant dense<0.000000e+00> : vector<16x64xf32>
    %3 = tpu.matmul %1, %2, %cst {dimension_numbers = #tpu.dot_dimension_numbers<[1], [0], [0], [1], [0, 0, 1, 1], [], []>} : vector<16x16xf32>, vector<16x64xf32>, vector<16x64xf32> -> vector<16x64xf32>
    %c16_i32 = arith.constant 16 : i32
    %4 = arith.muli %arg1, %c16_i32 : i32
    %5 = tpu.iota {dimensions = array<i32: 0>} : vector<16x1xi32>
    %6 = vector.broadcast %4 : i32 to vector<16x1xi32>
    %7 = arith.addi %6, %5 : vector<16x1xi32>
    %c40_i32 = arith.constant 40 : i32
    %8 = vector.broadcast %c40_i32 : i32 to vector<16x1xi32>
    %9 = arith.cmpi slt, %7, %8 : vector<16x1xi32>
    %cst_4 = arith.constant 0.000000e+00 : f32
    %10 = vector.shape_cast %9 : vector<16x1xi1> to vector<16x1xi1>
    %11 = vector.broadcast %10 : vector<16x1xi1> to vector<16x64xi1>
    %12 = vector.broadcast %cst_4 : f32 to vector<16x64xf32>
    %13 = arith.select %11, %3, %12 : vector<16x64xi1>, vector<16x64xf32>
    %cst_5 = arith.constant dense<0.000000e+00> : vector<64xf32>
    %14 = vector.multi_reduction <add>, %13, %cst_5 [0] : vector<16x64xf32> to vector<64xf32>
    %15 = vector.shape_cast %14 : vector<64xf32> to vector<1x64xf32>
    %16 = arith.mulf %13, %13 : vector<16x64xf32>
    %cst_6 = arith.constant dense<0.000000e+00> : vector<64xf32>
    %17 = vector.multi_reduction <add>, %16, %cst_6 [0] : vector<16x64xf32> to vector<64xf32>
    %18 = vector.shape_cast %17 : vector<64xf32> to vector<1x64xf32>
    %19 = tpu.concatenate %15, %18 in 0 : vector<1x64xf32>, vector<1x64xf32> -> vector<2x64xf32>
    %c0_i32 = arith.constant 0 : i32
    %20 = arith.cmpi eq, %arg1, %c0_i32 : i32
    %21 = arith.extui %20 : i1 to i32
    %c0_i32_7 = arith.constant 0 : i32
    %22 = arith.cmpi ne, %21, %c0_i32_7 : i32
    scf.if %22 {
      %c0_13 = arith.constant 0 : index
      %c0_14 = arith.constant 0 : index
      %c0_15 = arith.constant 0 : index
      %29 = vector.load %arg5[%c0_13, %c0_14, %c0_15] : memref<1x2x64xf32, #tpu.memory_space<vmem>>, vector<1x2x64xf32>
      %30 = vector.shape_cast %29 : vector<1x2x64xf32> to vector<2x64xf32>
      %31 = vector.shape_cast %19 : vector<2x64xf32> to vector<1x2x64xf32>
      tpu.vector_store %arg5[%c0_13, %c0_14, %c0_15], %31 {strides = array<i32>} : memref<1x2x64xf32, #tpu.memory_space<vmem>>, vector<1x2x64xf32>,
    } else {
    }
    %c0_i32_8 = arith.constant 0 : i32
    %23 = arith.cmpi sgt, %arg1, %c0_i32_8 : i32
    %24 = arith.extui %23 : i1 to i32
    %c0_i32_9 = arith.constant 0 : i32
    %25 = arith.cmpi ne, %24, %c0_i32_9 : i32
    scf.if %25 {
      %c0_13 = arith.constant 0 : index
      %c0_14 = arith.constant 0 : index
      %c0_15 = arith.constant 0 : index
      %29 = vector.load %arg5[%c0_13, %c0_14, %c0_15] : memref<1x2x64xf32, #tpu.memory_space<vmem>>, vector<1x2x64xf32>
      %30 = vector.shape_cast %29 : vector<1x2x64xf32> to vector<2x64xf32>
      %31 = arith.addf %30, %19 : vector<2x64xf32>
      %c0_16 = arith.constant 0 : index
      %c0_17 = arith.constant 0 : index
      %c0_18 = arith.constant 0 : index
      %32 = vector.load %arg5[%c0_16, %c0_17, %c0_18] : memref<1x2x64xf32, #tpu.memory_space<vmem>>, vector<1x2x64xf32>
      %33 = vector.shape_cast %32 : vector<1x2x64xf32> to vector<2x64xf32>
      %34 = vector.shape_cast %31 : vector<2x64xf32> to vector<1x2x64xf32>
      tpu.vector_store %arg5[%c0_16, %c0_17, %c0_18], %34 {strides = array<i32>} : memref<1x2x64xf32, #tpu.memory_space<vmem>>, vector<1x2x64xf32>,
    } else {
    }
    %c0_10 = arith.constant 0 : index
    %c0_11 = arith.constant 0 : index
    %c0_12 = arith.constant 0 : index
    %26 = vector.load %arg4[%c0_10, %c0_11, %c0_12] : memref<1x16x64xf32, #tpu.memory_space<vmem>>, vector<1x16x64xf32>
    %27 = vector.shape_cast %26 : vector<1x16x64xf32> to vector<16x64xf32>
    %28 = vector.shape_cast %3 : vector<16x64xf32> to vector<1x16x64xf32>
    tpu.vector_store %arg4[%c0_10, %c0_11, %c0_12], %28 {strides = array<i32>} : memref<1x16x64xf32, #tpu.memory_space<vmem>>, vector<1x16x64xf32>,
    return
  }
  func.func @transform_0(%arg0: i32, %arg1: i32) -> (i32, i32, i32) {
    %c0_i32 = arith.constant 0 : i32
    %c0_i32_0 = arith.constant 0 : i32
    return %arg0, %arg1, %c0_i32 : i32, i32, i32
  }
  func.func @transform_1(%arg0: i32, %arg1: i32) -> (i32, i32) {
    %c0_i32 = arith.constant 0 : i32
    %c0_i32_0 = arith.constant 0 : i32
    %c0_i32_1 = arith.constant 0 : i32
    return %c0_i32, %c0_i32_0 : i32, i32
  }
  func.func @transform_2(%arg0: i32, %arg1: i32) -> (i32, i32, i32) {
    %c0_i32 = arith.constant 0 : i32
    %c0_i32_0 = arith.constant 0 : i32
    return %arg0, %arg1, %c0_i32 : i32, i32, i32
  }
  func.func @transform_3(%arg0: i32, %arg1: i32) -> (i32, i32, i32) {
    %c0_i32 = arith.constant 0 : i32
    %c0_i32_0 = arith.constant 0 : i32
    %c0_i32_1 = arith.constant 0 : i32
    return %arg0, %c0_i32, %c0_i32_0 : i32, i32, i32
  }
}

</mosaic_0001>

<bundles_post_ra>
// kernel: tpu_custom_call.1
= control target key start
LH: loop header
LB: loop body
LE: loop exit
PB: predicated region body
PF: predicated region fallthrough
CT: control target
= control target key end

     0   :  { %s1076_s0 = inlined_call_operand.vmem [shape: f32[4,48,16], index: 0, kind: input, shape index: {}]   ;;  %s1077_s1 = inlined_call_operand.vmem [shape: f32[16,64], index: 1, kind: input, shape index: {}]   ;;  %s1078_s2 = inlined_call_operand.hbm [shape: f32[4,48,64], index: 2, kind: output, shape index: {0}]   ;;  %s1079_s3 = inlined_call_operand.hbm [shape: f32[4,2,64], index: 3, kind: output, shape index: {1}]  }
   0x1   :  { %1086 = sst [smem:[#allocation12_spill]] %s1076_s0 }
   0x2   :  { %1087 = sst [smem:[#allocation13_spill]] %s1077_s1 }
   0x3   :  { %1088 = sst [smem:[#allocation14_spill]] %s1078_s2 }
   0x4   :  { %9 = vsyncpa [#allocation3], 0 }
   0x5   :  { %11 = vsyncpa [#allocation3 + $0x1], 0 }
   0x6   :  { %12 = vsyncpa [#allocation5], 0 }
   0x7   :  { %14 = vsyncpa [#allocation5 + $0x1], 0  ;;  %s815_s12 = smov 0   ;;  %s817_s13 = smov 0  }
   0x8   :  { %s819_s14 = smov 0   ;;  %s821_s15 = smov 0  }
   0x9   :  { %s823_s16 = smov 0   ;;  %s825_s17 = smov 0  }
   0xa   :  { %s827_s18 = smov 0   ;;  %s829_s19 = smov 0  }
   0xb   :  { %s831_s20 = smov 0   ;;  %s833_s21 = smov 0  }
   0xc   :  { %s835_s22 = smov 0  }
   0xd LB: > { %1089 = sst [smem:[#allocation8_spill]] %s781_s20  ;;  %s499_s23 = sadd.s32 4294967295, %s789_s22   ;;  %s789_s22 = sphi %s835_s22, %s20_s22   ;;  %s785_s21 = sphi %s833_s21, %s1107_s21   ;;  %s781_s20 = sphi %s831_s20, %s1106_s20   ;;  %s777_s19 = sphi %s829_s19, %s1105_s19   ;;  %s773_s18 = sphi %s827_s18, %s1104_s18   ;;  %s769_s17 = sphi %s825_s17, %s1113_s17   ;;  %s765_s16 = sphi %s823_s16, %s1112_s16   ;;  %s761_s15 = sphi %s821_s15, %s1111_s15   ;;  %s757_s14 = sphi %s819_s14, %s1110_s14   ;;  %s753_s13 = sphi %s817_s13, %s1109_s13   ;;  %s749_s12 = sphi %s815_s12, %s1108_s12  }
   0xe   : > { %1090 = sst [smem:[#allocation9_spill]] %s785_s21  ;;  %s500_s24 = sadd.s32 4294967294, %s789_s22  }
   0xf   : > { %s29_s25 = sadd.s32 1, %s781_s20  ;;  %s32_s26 = sadd.s32 1, %s785_s21 }
  0x10   : > { %p30_p0 = scmp.ge.s32.totalorder %s29_s25, 3  ;;  %s90_s27 = sadd.s32 1, %s769_s17 }
  0x11   : > { %p100_p1 = scmp.ne.s32.totalorder %s769_s17, %s765_s16  ;;  %p877_p2 = scmp.eq.s32.totalorder %s499_s23, 11 }
  0x12   : > { %s1115_s25 = smov (%p30_p0, %s29_s25), 0  ;;  %s1117_s26 = smov (!%p30_p0, %s32_s26), %s785_s21 }
  0x13   : > { %1092 = sst [smem:[#allocation10_spill]] %s1115_s25  ;;  %s86_s29 = ssub.s32 %s781_s20, %s1115_s25 }
  0x14   : > { %p888_p3 = por %p877_p2, %p100_p1  ;;  %p34_p4 = scmp.ge.s32.totalorder %s1117_s26, 4 }
  0x15   : > { %p106_p5 = scmp.ne.s32.totalorder %s765_s16, %s761_s15  ;;  %p894_p6 = scmp.eq.s32.totalorder %s500_s24, 11 }
  0x16   : > { %s116_s5 = sadd.s32 1, %s757_s14  ;;  %s1119_s26 = smov (%p34_p4, %s1117_s26), 0 }
  0x17   : > { %1095 = sst [smem:[#allocation11_spill]] %s1119_s26  ;;  %p903_p7 = por %p894_p6, %p106_p5 }
  0x18   : > { %p126_p8 = scmp.ne.s32.totalorder %s757_s14, %s753_s13  ;;  %s85_s7 = ssub.s32 %s785_s21, %s1119_s26 }
  0x19   : > { %p132_p9 = scmp.ne.s32.totalorder %s753_s13, %s749_s12  ;;  %s87_s8 = sor.u32 %s86_s29, %s85_s7 }
  0x1a   : > { %p114_p10 = scmp.eq.s32.totalorder %s85_s7, 0  ;;  %p88_p11 = scmp.eq.s32.totalorder %s87_s8, 0 }
  0x1b   : > { %p915_p12 = por %p126_p8, %p877_p2  ;;  %p927_p13 = por %p132_p9, %p894_p6 }
  0x1c   : > { %s920_s10 = scalar_select %p114_p10, %s757_s14, %s116_s5  }
  0x1d   : > { %s923_s11 = scalar_select %p88_p11, %s769_s17, %s90_s27  }
  0x1e   : > { %p503_p0 = scmp.ge.s32.totalorder %s789_s22, 1  ;;  %p167_p1 = scmp.lt.s32.totalorder %s789_s22, 13 }
  0x20   : > { %p168_p4 = pnand %p503_p0, %p167_p1 }
  0x21   : > { %s1081_s24 = sand.u32 (!%p168_p4), 1, %s765_s16   ;;  %s1083_s28 = sand.u32 (!%p168_p4), 1, %s753_s13   ;;  %vm215_vm0 = vcmask (!%p168_p4), 130048   ;;  %v298_v5 = vlaneseq (!%p168_p4)  ;;  %vm312_vm2 = vcmask (!%p168_p4), 523264   ;;  %vm333_vm4 = vcmask (!%p168_p4), 1040384  }
  0x22   : > { %171 = sbr.rel (%p168_p4) target bundleno = 346 (0x15a), region = 28  ;;  %s1099_s1 = sld [smem:[#allocation13_spill]] (!%p168_p4) }
  0x23   : > { %s943_s7 = sshll.u32 (!%p168_p4), %s1081_s24, 4  ;;  %s947_s8 = sshll.u32 (!%p168_p4), %s1083_s28, 1  ;;  %v299_v6 = vshrl.u32 (!%p168_p4), %v298_v5, 7 }
  0x24   : > { %s950_s26 = sshll.u32 (!%p168_p4), %s773_s18, 1  ;;  %p201_p2 = scmp.lt.s32.totalorder (!%p168_p4), %s777_s19, 3 }
  0x25   : > { %p203_p5 = scmp.lt.s32.totalorder (!%p168_p4), %s950_s26, 5  ;;  %s1100_s0 = sld [smem:[#allocation12_spill]] (!%p168_p4)  ;;  %v300_v7 = vadd.s32 (!%p168_p4), 8, %v299_v6 }
  0x26   : > { %s510_s21 = sshll.u32 (!%p168_p4), %s773_s18, 4  ;;  %p511_p6 = scmp.ne.s32.totalorder (!%p168_p4), %s773_s18, 0 }
  0x27   : > { %v301_v8 = vstv (!%p168_p4), %s510_s21  ;;  %s966_s21 = scalar_lea.vmem (!%p168_p4), [#allocation4], %s947_s8 }
  0x28   : > { %v213_v0 = vld [vmem:[%s1099_s1] sm:$0xff] (!%p168_p4)  ;;  %v214_v1 = vld [vmem:[%s1099_s1 + $0x8] sm:$0xff] (!%p168_p4)  ;;  %v303_v9 = vadd.s32 (!%p168_p4), %v301_v8, %v300_v7  ;;  %v302_v10 = vadd.s32 (!%p168_p4), %v301_v8, %v299_v6 }
  0x29   : > { %v531_v2 = vpack.c.bf16 %v214_v1, %v213_v0  ;;  %s202_s27 = scalar_select %p201_p2, %s777_s19, 3 }
  0x2a   : > { %s204_s29 = scalar_select %p203_p5, %s950_s26, 5  ;;  %vm305_vm1 = vcmp.lt.s32.totalorder %v303_v9, 40  ;;  %vm304_vm3 = vcmp.lt.s32.totalorder %v302_v10, 40 }
  0x2b   : > { %532 = vmatprep.subr.bf16.mxu0 %v531_v2  ;;  %s535_s4 = smul.u32 6, %s202_s27  ;;  %vm339_vm5 = vcmask (!%p511_p6), 517120  }
  0x2c   : > { %534 = vmatpush3.bf16.msra.mxu0 %v531_v2 }
  0x2d   : > { %s206_s5 = sadd.s32 %s535_s4, %s204_s29 }
  0x2e   : > { %s507_s1 = sshll.u32 %s206_s5, 3 }
  0x2f   : > { %s208_s28 = scalar_lea.vmem %s1100_s0, %s507_s1  ;;  %s192_s1 = scalar_lea.vmem [#allocation2], %s943_s7 }
  0x30   : > { %v211_v3 = vld [vmem:[%s208_s28] sm:$0xff]  ;;  %v212_v4 = vld [vmem:[%s208_s28 + $0x8] sm:$0xff] }
  0x31   : > { %528 = vmatprep.mubr.msk.f32.mxu0 %vm215_vm0, %v211_v3 }
  0x32   : > { %529 = vmatmul.mubr.msk.f32.vlgmr.msra.gmra.mrb[0].mxu0 %vm215_vm0, %v212_v4 }
 0x105   : > { %v530_v11 = vpop.f32.mrb[0].mxu0 }
 0x106   : > { %v311_v12 = vsel %vm305_vm1, %v530_v11, 0.0  ;;  %v288_v13 = vpop.f32.mrb[1].mxu0 }
 0x107   : > { %v314_v14 = vsel %vm312_vm2, %v311_v12, 0.0  ;;  %v323_v15 = vmul.f32 %v311_v12, %v311_v12  ;;  %v310_v16 = vsel %vm304_vm3, %v288_v13, 0.0 }
 0x108   : > { %v313_v17 = vsel %vm312_vm2, %v310_v16, 0.0  ;;  %v322_v18 = vmul.f32 %v310_v16, %v310_v16 }
 0x109   : > { %v325_v19 = vsel %vm312_vm2, %v323_v15, 0.0  ;;  %v315_v20 = vadd.f32 %v314_v14, %v313_v17 }
 0x10a   : > { %v324_v21 = vsel %vm312_vm2, %v322_v18, 0.0 }
 0x10b   : > { %v316_v22 = vrot.slane %v315_v20, 4  ;;  %v326_v23 = vadd.f32 %v325_v19, %v324_v21 }
 0x10d   : > { %v317_v24 = vadd.f32 %v316_v22, %v315_v20  ;;  %v327_v25 = vrot.slane %v326_v23, 4 }
 0x10f   : > { %v318_v26 = vrot.slane %v317_v24, 2  ;;  %v328_v27 = vadd.f32 %v327_v25, %v326_v23 }
 0x111   : > { %v319_v28 = vadd.f32 %v318_v26, %v317_v24  ;;  %v329_v29 = vrot.slane %v328_v27, 2 }
 0x113   : > { %v320_v30 = vrot.slane %v319_v28, 1  ;;  %v330_v31 = vadd.f32 %v329_v29, %v328_v27  ;;  %338 = sbr.rel (%p511_p6) target bundleno = 283 (0x11b), region = 32 }
 0x115   : > { %v331_v32 = vrot.slane %v330_v31, 1  ;;  %v321_v33 = vadd.f32 %v320_v30, %v319_v28 }
 0x117   : > { %v332_v34 = vadd.f32 %v331_v32, %v330_v31 }
 0x119   : > { %v334_v35 = vsel %vm333_vm4, %v321_v33, %v332_v34 }
 0x11a   : > { %340 = vst.msk [vmem:[%s966_s21] sm:$0x3] %vm339_vm5, %v334_v35 }
 0x11b PF: > { %p512_p8 = scmp.le.s32.totalorder %s773_s18, 0 }
 0x11c   : > { %vm347_vm6 = vcmask (!%p512_p8), 517120  }
 0x11d   : > { %344 = sbr.rel (%p512_p8) target bundleno = 293 (0x125), region = 36 }
 0x121   : > { %v345_v36 = vld [vmem:[%s966_s21] sm:$0x3] (!%p512_p8) }
 0x122   : > { %v346_v37 = vadd.f32 (!%p512_p8), %v345_v36, %v334_v35 }
 0x124   : > { %348 = vst.msk [vmem:[%s966_s21] sm:$0x3] %vm347_vm6, %v346_v37 }
 0x125 PF: > { %349 = vst.msk [vmem:[%s192_s1] sm:$0xff] %vm312_vm2, %v288_v13  ;;  %350 = vst.msk [vmem:[%s192_s1 + $0x8] sm:$0xff] %vm312_vm2, %v530_v11  ;;  %s536_s25 = smul.u32 6, %s777_s19  ;;  %s372_s24 = sshll.u32 %s192_s1, 4  ;;  %s977_s24 = int_to_ptr.vmem [resolvable:$true] %s372_s24 }
 0x126   : > { %s1101_s2 = sld [smem:[#allocation14_spill]]  ;;  %s1102_s29 = sand.u32 1, %s765_s16  }
 0x127   : > { %s369_s28 = sadd.s32 %s536_s25, %s950_s26  ;;  %s986_s4 = scalar_lea.sflag [#allocation3], %s1102_s29 }
 0x128   : > { %s516_s18 = sshll.u32 %s369_s28, 7  ;;  %s639_s5 = scalar_lea.vmem %s977_s24, 256 }
 0x129   : > { %p640_p9 = scmp.ne.s32.totalorder %s977_s24, %s639_s5  ;;  %s791_s26 = smov [#allocation2]  }
 0x12a   : > { %s643_s1 = sshll.u32 %s791_s26, 4  ;;  %s644_s1 = int_to_ptr.vmem [resolvable:$false] %s643_s1 }
 0x12b   : > { %p641_p10 = pnand %p640_p9, %p888_p3  ;;  %s645_s25 = scalar_lea.vmem %s644_s1, 512 }
 0x12c   : > { %s982_s27 = scalar_lea.hbm %s1101_s2, %s516_s18  ;;  %p646_p0 = scmp.lt.s32.totalorder %s977_s24, %s644_s1 }
 0x12d   : > { %p642_p11 = pneg %p641_p10  ;;  %p647_p1 = scmp.lt.s32.totalorder %s645_s25, %s639_s5 }
 0x12f   : > { %p648_p4 = por %p647_p1, %p646_p0 }
 0x131   : > { %p649_p2 = pnand %p648_p4, %p642_p11 }
 0x133   : > { %652 = shalt.err (!%p649_p2)
}
 0x134   : > { %s653_s28 = scalar_lea.hbm %s982_s27, 256  ;;  %s657_s8 = scalar_lea.hbm %s1101_s2, 3072 }
 0x135   : > { %p654_p5 = scmp.ne.s32.totalorder %s982_s27, %s653_s28  ;;  %p658_p9 = scmp.lt.u32.totalorder %s982_s27, %s1101_s2 }
 0x136   : > { %p659_p10 = scmp.lt.u32.totalorder %s657_s8, %s653_s28  ;;  %p661_p0 = scmp.lt.u32.totalorder %s653_s28, %s982_s27 }
 0x137   : > { %p655_p6 = pnand %p654_p5, %p888_p3 }
 0x138   : > { %p660_p11 = por %p659_p10, %p658_p9 }
 0x139   : > { %p656_p8 = pneg %p655_p6 }
 0x13a   : > { %p662_p1 = por %p661_p0, %p660_p11 }
 0x13c   : > { %p663_p4 = pnand %p662_p1, %p656_p8 }
 0x13e   : > { %666 = shalt.err (!%p663_p4)
}
 0x13f   : > { %s792_s5 = smov 128   ;;  %s793_s1 = smov 8  }
 0x140   : > { %537 = dma.vmem_to_hbm [thread:$0]  (%p888_p3), %s977_s24, 256, %s982_s27, %s986_s4, %s792_s5, %s792_s5, %s793_s1  }
 0x141   : > { %s517_s25 = sshll.u32 %s777_s19, 5  ;;  %s388_s18 = sshll.u32 %s966_s21, 4  ;;  %s389_s18 = int_to_ptr.vmem [resolvable:$true] %s388_s18 }
 0x142   : > { %s1015_s28 = scalar_lea.hbm %s1079_s3, %s517_s25  ;;  %s1103_s29 = sand.u32 1, %s753_s13  }
 0x143   : > { %s357_s26 = scalar_lea.sflag [#allocation5], %s1103_s29  ;;  %s667_s0 = scalar_lea.vmem %s389_s18, 32 }
 0x144   : > { %p668_p2 = scmp.ne.s32.totalorder %s389_s18, %s667_s0  ;;  %s794_s2 = smov [#allocation4]  }
 0x145   : > { %s671_s20 = sshll.u32 %s794_s2, 4  ;;  %s672_s20 = int_to_ptr.vmem [resolvable:$false] %s671_s20 }
 0x146   : > { %p669_p5 = pnand %p668_p2, %p915_p12  ;;  %s673_s30 = scalar_lea.vmem %s672_s20, 64 }
 0x147   : > { %p674_p3 = scmp.lt.s32.totalorder %s389_s18, %s672_s20  ;;  %p675_p8 = scmp.lt.s32.totalorder %s673_s30, %s667_s0 }
 0x148   : > { %p670_p6 = pneg %p669_p5 }
 0x149   : > { %p676_p9 = por %p675_p8, %p674_p3 }
 0x14b   : > { %p677_p10 = pnand %p676_p9, %p670_p6 }
 0x14d   : > { %680 = shalt.err (!%p677_p10)
}
 0x14e   : > { %s681_s19 = scalar_lea.hbm %s1015_s28, 32  ;;  %s685_s2 = scalar_lea.hbm %s1079_s3, 128 }
 0x14f   : > { %p682_p11 = scmp.ne.s32.totalorder %s1015_s28, %s681_s19  ;;  %p686_p4 = scmp.lt.u32.totalorder %s1015_s28, %s1079_s3 }
 0x150   : > { %p687_p2 = scmp.lt.u32.totalorder %s685_s2, %s681_s19  ;;  %p689_p6 = scmp.lt.u32.totalorder %s681_s19, %s1015_s28 }
 0x151   : > { %p683_p0 = pnand %p682_p11, %p915_p12 }
 0x152   : > { %p688_p5 = por %p687_p2, %p686_p4 }
 0x153   : > { %p684_p1 = pneg %p683_p0 }
 0x154   : > { %p690_p3 = por %p689_p6, %p688_p5 }
 0x156   : > { %p691_p8 = pnand %p690_p3, %p684_p1 }
 0x158   : > { %694 = shalt.err (!%p691_p8)
}
 0x159   : > { %538 = dma.vmem_to_hbm [thread:$0]  (%p915_p12), %s389_s18, 32, %s1015_s28, %s357_s26  }
 0x15a PF: > { %p548_p9 = scmp.ge.s32.totalorder %s789_s22, 2  ;;  %s400_s0 = sand.u32 1, %s761_s15  }
 0x15b   : > { %s401_s4 = scalar_lea.sflag [#allocation3], %s400_s0 }
 0x15c   : > { %p542_p10 = pnand %p548_p9, %p903_p7 }
 0x15e   : > { %740 = dma.done.wait (!%p542_p10), %s401_s4, 256  }
 0x15f   : > { %742 = vsyncadd (!%p542_p10), %s401_s4, 4294967040  ;;  %s409_s5 = sand.u32 1, %s749_s12   ;;  %p545_p11 = pnand %p548_p9, %p927_p13 }
 0x160   : > { %s410_s1 = scalar_lea.sflag [#allocation5], %s409_s5 }
 0x161   : > { %744 = dma.done.wait (!%p545_p11), %s410_s1, 32  }
 0x162   : > { %746 = vsyncadd (!%p545_p11), %s410_s1, 4294967264  ;;  %s20_s22 = sadd.s32 1, %s789_s22   ;;  %s1104_s18 = sld [smem:[#allocation8_spill]] }
 0x163   : > { %p17_p12 = scmp.ge.s32.totalorder %s20_s22, 14   ;;  %s1105_s19 = sld [smem:[#allocation9_spill]] }
 0x164   : > { %s1106_s20 = sld [smem:[#allocation10_spill]]  ;;  %s1107_s21 = sld [smem:[#allocation11_spill]] }
 0x165   : > { %s1108_s12 = smov %s753_s13  ;;  %s1109_s13 = smov %s757_s14 }
 0x166   : > { %s1110_s14 = smov %s920_s10  ;;  %s1111_s15 = smov %s765_s16 }
 0x167   : > { %s1112_s16 = smov %s769_s17  ;;  %s1113_s17 = smov %s923_s11 }
 0x168   :  { %19 = sbr.rel (!%p17_p12) target bundleno = 13 (0xd), region = 88 }
 0x16f   :  { %415 = vsyncpa [#allocation3], 1 }
 0x170   :  { %417 = vsyncpa [#allocation3 + $0x1], 1 }
 0x171   :  { %418 = vsyncpa [#allocation5], 1 }
 0x172   :  { %420 = vsyncpa [#allocation5 + $0x1], 1 }

</bundles_post_ra>
